<compile_context>
chip_gen: v7x
topology: tpu7x:2x2x1
jax: 0.10.0
libtpu: 0.0.40
codegen_flags: <defaults>
</compile_context>

<pallas_src>
import jax
import jax.numpy as jnp
import numpy as np
from jax import lax
from jax.experimental import pallas as pl
from jax.experimental.pallas import tpu as pltpu


_BLOCK_BUDGET_BYTES = 2 * 1024 * 1024   # per feature-input block (before 2x buffering)
_VMEM_LIMIT_BYTES = 32 * 1024 * 1024    # explicit: > v5e 16MiB default, < v7x 64MiB


# --------------------------------------------------------------------------
# scalar epilogue (plain JAX): union mean / unbiased std + masked-L1 mean
# --------------------------------------------------------------------------
def _combine_partials(parts, n_pool):
    s = jnp.sum(parts[:, 0, 0])
    sq = jnp.sum(parts[:, 0, 1])
    ad = jnp.sum(parts[:, 0, 2])
    n_u = jnp.float32(2 * n_pool)                     # union element count
    mean = s / n_u
    var = (sq - n_u * mean * mean) / (n_u - jnp.float32(1.0))
    std = jnp.sqrt(var)
    return ad / (jnp.float32(n_pool) * std)


def _write_packed(out_ref, s, sq, ad):
    # pack 3 scalars into lanes 0/1/2 of a lane-dense (1,1,128) output block
    lane = lax.broadcasted_iota(jnp.int32, out_ref.shape, len(out_ref.shape) - 1)
    out_ref[...] = (jnp.where(lane == 0, s, 0.0)
                    + jnp.where(lane == 1, sq, 0.0)
                    + jnp.where(lane == 2, ad, 0.0))


# --------------------------------------------------------------------------
# 4-D branch: MaxPool2d(2) + fused reduction on a lane-dense (n, c, H*W) layout
# --------------------------------------------------------------------------
def _make_kernel_2d(H, W, use_mask_cache):
    L = H * W
    Lp = L - W - 1   # pooled-candidate positions (anchors p = h*W + w)

    def pool(x):
        # 2x2 window anchored at p: max over {p, p+1, p+W, p+W+1}; invalid
        # anchors (odd h/w, floor-dropped rows/cols) are zeroed via vf later.
        v = jnp.maximum(x[..., : L - W], x[..., W:])
        return jnp.maximum(v[..., :Lp], v[..., 1:])

    def accumulate(real_ref, fake_ref, mp, vf, acc_s, acc_sq, acc_ad):
        rp = pool(real_ref[...].astype(jnp.float32))      # (bn, bc, Lp)
        fp = pool(fake_ref[...].astype(jnp.float32))
        vf_b = jnp.broadcast_to(vf, rp.shape)             # hoisted, reused twice
        s_p = (rp + fp) * vf_b
        sq_p = (rp * rp + fp * fp) * vf_b
        ad_p = jnp.abs((rp - fp) * mp)                    # mp already carries vf
        # shrink accumulators: major-axis add then sublane reduce -> (Lp,),
        # so each accumulator is a single (1, Lp) row (tiny RMW, off vst slot).
        acc_s[...] = acc_s[...] + jnp.sum(jnp.sum(s_p, axis=0), axis=0)
        acc_sq[...] = acc_sq[...] + jnp.sum(jnp.sum(sq_p, axis=0), axis=0)
        acc_ad[...] = acc_ad[...] + jnp.sum(jnp.sum(ad_p, axis=0), axis=0)

    def finalize(j, out_ref, acc_s, acc_sq, acc_ad):
        @pl.when(j == pl.num_programs(1) - 1)
        def _fin():
            _write_packed(out_ref, jnp.sum(acc_s[...]), jnp.sum(acc_sq[...]),
                          jnp.sum(acc_ad[...]))

    if use_mask_cache:
        def kernel(real_ref, fake_ref, mask_ref, vf_ref, out_ref,
                   mp_c, acc_s, acc_sq, acc_ad):
            j = pl.program_id(1)
            vf = vf_ref[...].reshape(1, 1, Lp)

            @pl.when(j == 0)
            def _init():
                # the mask block only changes with the sample axis: pool it once
                # per sample and reuse the (mask * validity) product for all
                # channel tiles.
                mp_c[...] = pool(mask_ref[...].astype(jnp.float32)) * vf
                acc_s[...] = jnp.zeros_like(acc_s)
                acc_sq[...] = jnp.zeros_like(acc_sq)
                acc_ad[...] = jnp.zeros_like(acc_ad)

            accumulate(real_ref, fake_ref, mp_c[...], vf, acc_s, acc_sq, acc_ad)
            finalize(j, out_ref, acc_s, acc_sq, acc_ad)

        return kernel

    def kernel(real_ref, fake_ref, mask_ref, vf_ref, out_ref,
               acc_s, acc_sq, acc_ad):
        j = pl.program_id(1)
        vf = vf_ref[...].reshape(1, 1, Lp)

        @pl.when(j == 0)
        def _init():
            acc_s[...] = jnp.zeros_like(acc_s)
            acc_sq[...] = jnp.zeros_like(acc_sq)
            acc_ad[...] = jnp.zeros_like(acc_ad)

        mp = pool(mask_ref[...].astype(jnp.float32)) * vf
        accumulate(real_ref, fake_ref, mp, vf, acc_s, acc_sq, acc_ad)
        finalize(j, out_ref, acc_s, acc_sq, acc_ad)

    return kernel


def _pick_blocks_2d(N, C, L, itemsize, budget):
    ch_bytes = L * itemsize
    sample_bytes = C * ch_bytes
    if sample_bytes <= budget:
        # whole samples fit: fold as many samples per block as possible
        bn = 1
        for d in range(1, N + 1):
            if N % d == 0 and d * sample_bytes <= budget:
                bn = d
        return bn, C
    # channel tiling: bc must be a multiple of 8 (sublane rule) dividing C
    bc = 0
    d = 8
    while d < C:
        if C % d == 0 and d * ch_bytes <= budget:
            bc = d
        d += 8
    if bc == 0:
        # TODO(synk): C with no usable multiple-of-8 divisor (or one channel
        # plane larger than the budget) falls back to a single big block; truly
        # huge H*W planes would additionally need lane-axis tiling.
        bc = 8 if C % 8 == 0 else C
    return 1, bc


def _term_2d(real, fake, mask, *, budget_bytes=_BLOCK_BUDGET_BYTES,
             vmem_limit_bytes=_VMEM_LIMIT_BYTES):
    N, C, H, W = real.shape
    assert fake.shape == real.shape
    assert H >= 2 and W >= 2, "MaxPool2d(2) needs H, W >= 2"
    assert mask.ndim == 4 and mask.shape[2:] == (H, W)
    mN, mC = mask.shape[0], mask.shape[1]
    assert mN in (1, N) and mC in (1, C)

    L = H * W
    Lp = L - W - 1
    Hh, Wh = H // 2, W // 2

    itemsize = jnp.dtype(real.dtype).itemsize
    bn, bc = _pick_blocks_2d(N, C, L, itemsize, budget_bytes)
    NT, CT = N // bn, C // bc

    real3 = real.reshape(N, C, L)            # pure reshapes: no HBM copies
    fake3 = fake.reshape(N, C, L)
    mask3 = mask.reshape(mN, mC, L)

    # static validity mask over anchors p = h*W + w: even (h, w) inside the
    # floor-pooled region (also kills the cross-row / cross-block shift junk).
    p = np.arange(Lp)
    h, w = p // W, p % W
    vf_np = ((h % 2 == 0) & (w % 2 == 0)
             & (h < 2 * (H // 2)) & (w < 2 * (W // 2))).astype(np.float32)
    vf_arr = jnp.asarray(vf_np[None, :])     # (1, Lp), resident in VMEM

    use_mask_cache = (CT > 1) and (mC == 1)

    feat_spec = pl.BlockSpec((bn, bc, L), lambda i, j: (i, j, 0))
    mbn = bn if mN == N else 1
    mbc = bc if mC == C else 1
    mask_spec = pl.BlockSpec(
        (mbn, mbc, L),
        lambda i, j: (i if mN == N else 0, j if mC == C else 0, 0))
    vf_spec = pl.BlockSpec((1, Lp), lambda i, j: (0, 0))
    out_spec = pl.BlockSpec((1, 1, 128), lambda i, j: (i, 0, 0))

    scratch = []
    if use_mask_cache:
        scratch.append(pltpu.VMEM((mbn, 1, Lp), jnp.float32))
    scratch += [pltpu.VMEM((1, Lp), jnp.float32)] * 3

    parts = pl.pallas_call(
        _make_kernel_2d(H, W, use_mask_cache),
        out_shape=jax.ShapeDtypeStruct((NT, 1, 128), jnp.float32),
        grid=(NT, CT),
        in_specs=[feat_spec, feat_spec, mask_spec, vf_spec],
        out_specs=out_spec,
        scratch_shapes=scratch,
        compiler_params=pltpu.CompilerParams(
            dimension_semantics=("parallel", "arbitrary"),
            vmem_limit_bytes=vmem_limit_bytes),
    )(real3, fake3, mask3, vf_arr)

    return _combine_partials(parts, N * C * Hh * Wh)


# --------------------------------------------------------------------------
# non-4-D branch: unsqueeze + MaxPool1d(2) + fused reduction (lane-dense F)
# --------------------------------------------------------------------------
def _make_kernel_1d(F):
    Fp = F - 1

    def pool(x):
        return jnp.maximum(x[:, :Fp], x[:, 1:])

    def kernel(real_ref, fake_ref, mask_ref, vf_ref, out_ref):
        vf = vf_ref[...]                                   # (1, Fp)
        rp = pool(real_ref[...].astype(jnp.float32))       # (bn, Fp)
        fp = pool(fake_ref[...].astype(jnp.float32))
        mp = pool(mask_ref[...].astype(jnp.float32)) * vf  # (bn or 1, Fp)
        vf_b = jnp.broadcast_to(vf, rp.shape)
        s_p = (rp + fp) * vf_b
        sq_p = (rp * rp + fp * fp) * vf_b
        ad_p = jnp.abs((rp - fp) * mp)
        _write_packed(out_ref, jnp.sum(s_p), jnp.sum(sq_p), jnp.sum(ad_p))

    return kernel


def _term_1d(real, fake, mask, *, budget_bytes=_BLOCK_BUDGET_BYTES,
             vmem_limit_bytes=_VMEM_LIMIT_BYTES):
    N, F = real.shape
    assert fake.shape == real.shape
    assert F >= 2, "MaxPool1d(2) needs F >= 2"
    assert mask.ndim == 2 and mask.shape[1] == F and mask.shape[0] in (1, N)
    mN = mask.shape[0]
    Fp = F - 1

    itemsize = jnp.dtype(real.dtype).itemsize
    row_bytes = F * itemsize
    if N * row_bytes <= budget_bytes:
        bn = N
    else:
        bn = 0
        d = 8
        while d < N:
            if N % d == 0 and d * row_bytes <= budget_bytes:
                bn = d
            d += 8
        if bn == 0:
            # TODO(synk): very wide rows / awkward N fall back to one big block.
            bn = 8 if N % 8 == 0 else N
    NT = N // bn

    p = np.arange(Fp)
    vf_np = ((p % 2 == 0) & (p < 2 * (F // 2))).astype(np.float32)
    vf_arr = jnp.asarray(vf_np[None, :])                   # (1, Fp)

    feat_spec = pl.BlockSpec((bn, F), lambda i: (i, 0))
    mask_spec = pl.BlockSpec((bn if mN == N else 1, F),
                             lambda i: (i if mN == N else 0, 0))
    vf_spec = pl.BlockSpec((1, Fp), lambda i: (0, 0))
    out_spec = pl.BlockSpec((1, 1, 128), lambda i: (i, 0, 0))

    parts = pl.pallas_call(
        _make_kernel_1d(F),
        out_shape=jax.ShapeDtypeStruct((NT, 1, 128), jnp.float32),
        grid=(NT,),
        in_specs=[feat_spec, feat_spec, mask_spec, vf_spec],
        out_specs=out_spec,
        compiler_params=pltpu.CompilerParams(
            dimension_semantics=("parallel",),
            vmem_limit_bytes=vmem_limit_bytes),
    )(real, fake, mask, vf_arr)

    return _combine_partials(parts, N * (F // 2))


# --------------------------------------------------------------------------
# public entry point (matches the PyTorch module forward)
# --------------------------------------------------------------------------
def semantic_reconstruction_loss(features_real, features_fake, masks,
                                 weight_factor: float = 0.1):
    assert len(features_real) == len(features_fake) == len(masks)
    total = jnp.float32(0.0)
    for fr, ff, m in zip(features_real, features_fake, masks):
        if ff.ndim == 4:
            total = total + _term_2d(fr, ff, m)
        else:
            total = total + _term_1d(fr, ff, m)
    loss = weight_factor * (total / len(features_real))
    return jnp.reshape(loss, (1,)).astype(jnp.float32)    # torch.tensor([..]) shape


# --------------------------------------------------------------------------
# pure-JAX reference (silent sanity check)
# --------------------------------------------------------------------------
def _ref_loss(features_real, features_fake, masks, weight_factor=0.1):
    total = jnp.float32(0.0)
    for fr, ff, m in zip(features_real, features_fake, masks):
        if ff.ndim == 4:
            def pool2(x):
                n, c, hh, ww = x.shape
                h2, w2 = hh // 2, ww // 2
                x = x[:, :, :2 * h2, :2 * w2]
                return x.reshape(n, c, h2, 2, w2, 2).max(axis=(3, 5))
            frp, ffp, mp = pool2(fr), pool2(ff), pool2(m.astype(fr.dtype))
        else:
            def pool1(x):
                n, f = x.shape
                f2 = f // 2
                return x[:, :2 * f2].reshape(n, 1, f2, 2).max(axis=-1)
            frp, ffp, mp = pool1(fr), pool1(ff), pool1(m)
        union = jnp.concatenate([frp, ffp], axis=0)
        mu = jnp.mean(union)
        sd = jnp.std(union, ddof=1)
        frn = (frp - mu) / sd
        ffn = (ffp - mu) / sd
        total = total + jnp.mean(jnp.abs((frn - ffn) * mp))
    return weight_factor * total / len(features_real)


if __name__ == "__main__":
    key = jax.random.PRNGKey(0)
    ks = jax.random.split(key, 18)

    # 4-D NCHW feature maps with per-sample masks
    fr4 = jax.random.normal(ks[0], (2, 4, 16, 16), jnp.float32)
    ff4 = jax.random.normal(ks[1], (2, 4, 16, 16), jnp.float32)
    m4 = (jax.random.uniform(ks[2], (2, 1, 16, 16)) > 0.5).astype(jnp.float32)

    # odd spatial dims (exercises floor-pooling semantics)
    fr4b = jax.random.normal(ks[3], (2, 3, 9, 7), jnp.float32)
    ff4b = jax.random.normal(ks[4], (2, 3, 9, 7), jnp.float32)
    m4b = (jax.random.uniform(ks[5], (2, 1, 9, 7)) > 0.5).astype(jnp.float32)

    # mask broadcast over batch AND channels
    fr4c = jax.random.normal(ks[6], (2, 8, 16, 16), jnp.float32)
    ff4c = jax.random.normal(ks[7], (2, 8, 16, 16), jnp.float32)
    m4c = (jax.random.uniform(ks[8], (1, 1, 16, 16)) > 0.5).astype(jnp.float32)

    # larger channel count (also reused below to force the channel-tiled path)
    fr4d = jax.random.normal(ks[9], (2, 16, 16, 16), jnp.float32)
    ff4d = jax.random.normal(ks[10], (2, 16, 16, 16), jnp.float32)
    m4d = (jax.random.uniform(ks[11], (2, 1, 16, 16)) > 0.5).astype(jnp.float32)

    # 2-D feature vectors (MaxPool1d branch)
    fr2 = jax.random.normal(ks[12], (2, 32), jnp.float32)
    ff2 = jax.random.normal(ks[13], (2, 32), jnp.float32)
    m2 = (jax.random.uniform(ks[14], (2, 32)) > 0.5).astype(jnp.float32)

    # odd feature length + mask broadcast over batch
    fr2b = jax.random.normal(ks[15], (2, 33), jnp.float32)
    ff2b = jax.random.normal(ks[16], (2, 33), jnp.float32)
    m2b = (jax.random.uniform(ks[17], (1, 33)) > 0.5).astype(jnp.float32)

    features_real = [fr4, fr4b, fr4c, fr4d, fr2, fr2b]
    features_fake = [ff4, ff4b, ff4c, ff4d, ff2, ff2b]
    masks = [m4, m4b, m4c, m4d, m2, m2b]

    loss = semantic_reconstruction_loss(features_real, features_fake, masks,
                                        weight_factor=0.1)
    loss = jax.block_until_ready(loss)

    ref = _ref_loss(features_real, features_fake, masks, weight_factor=0.1)
    assert loss.shape == (1,)
    assert jnp.allclose(loss[0], ref, rtol=1e-3, atol=1e-6), (loss, ref)

    # force the channel-tiled (CT > 1) + cached-pooled-mask path with a small
    # block budget and check it against the reference as well
    tiled = jax.block_until_ready(
        _term_2d(fr4d, ff4d, m4d, budget_bytes=9 * 1024))
    tiled_ref = _ref_loss([fr4d], [ff4d], [m4d], weight_factor=1.0)
    assert jnp.allclose(tiled, tiled_ref, rtol=1e-3, atol=1e-6), (tiled, tiled_ref)

    print("KERNEL_OK")
</pallas_src>

<mosaic_0001>
module attributes {stable_mosaic.version = 11 : i64} {
  func.func @kernel(%arg0: i32, %arg1: i32, %arg2: memref<2x4x256xf32, #tpu.memory_space<vmem>>, %arg3: memref<2x4x256xf32, #tpu.memory_space<vmem>>, %arg4: memref<2x1x256xf32, #tpu.memory_space<vmem>>, %arg5: memref<1x239xf32, #tpu.memory_space<vmem>>, %arg6: memref<1x1x128xf32, #tpu.memory_space<vmem>>, %arg7: memref<1x239xf32, #tpu.memory_space<vmem>>, %arg8: memref<1x239xf32, #tpu.memory_space<vmem>>, %arg9: memref<1x239xf32, #tpu.memory_space<vmem>>) attributes {dimension_semantics = [#tpu.dimension_semantics<parallel>, #tpu.dimension_semantics<arbitrary>], iteration_bounds = array<i64: 1, 1>, scalar_prefetch = 0 : i64, scratch_operands = 3 : i64, tpu.core_type = #tpu.core_type<tc>, window_params = [{transform_indices = @transform_0, window_bounds = array<i64: 2, 4, 256>}, {transform_indices = @transform_1, window_bounds = array<i64: 2, 4, 256>}, {transform_indices = @transform_2, window_bounds = array<i64: 2, 1, 256>}, {pipeline_mode = #tpu.pipeline_mode<synchronous>, transform_indices = @transform_3, window_bounds = array<i64: 1, 239>}, {transform_indices = @transform_4, window_bounds = array<i64: 1, 1, 128>}]} {
    %c0 = arith.constant 0 : index
    %c0_0 = arith.constant 0 : index
    %0 = vector.load %arg5[%c0, %c0_0] : memref<1x239xf32, #tpu.memory_space<vmem>>, vector<1x239xf32>
    %1 = vector.shape_cast %0 : vector<1x239xf32> to vector<1x1x239xf32>
    %c0_i32 = arith.constant 0 : i32
    %2 = arith.cmpi eq, %arg1, %c0_i32 : i32
    %3 = arith.extui %2 : i1 to i32
    %c0_i32_1 = arith.constant 0 : i32
    %4 = arith.cmpi ne, %3, %c0_i32_1 : i32
    scf.if %4 {
      %cst_30 = arith.constant 0.000000e+00 : f32
      %61 = vector.broadcast %cst_30 : f32 to vector<1x239xf32>
      %c0_31 = arith.constant 0 : index
      %c0_32 = arith.constant 0 : index
      %62 = vector.load %arg7[%c0_31, %c0_32] : memref<1x239xf32, #tpu.memory_space<vmem>>, vector<1x239xf32>
      tpu.vector_store %arg7[%c0_31, %c0_32], %61 {strides = array<i32>} : memref<1x239xf32, #tpu.memory_space<vmem>>, vector<1x239xf32>,
      %cst_33 = arith.constant 0.000000e+00 : f32
      %63 = vector.broadcast %cst_33 : f32 to vector<1x239xf32>
      %c0_34 = arith.constant 0 : index
      %c0_35 = arith.constant 0 : index
      %64 = vector.load %arg8[%c0_34, %c0_35] : memref<1x239xf32, #tpu.memory_space<vmem>>, vector<1x239xf32>
      tpu.vector_store %arg8[%c0_34, %c0_35], %63 {strides = array<i32>} : memref<1x239xf32, #tpu.memory_space<vmem>>, vector<1x239xf32>,
      %cst_36 = arith.constant 0.000000e+00 : f32
      %65 = vector.broadcast %cst_36 : f32 to vector<1x239xf32>
      %c0_37 = arith.constant 0 : index
      %c0_38 = arith.constant 0 : index
      %66 = vector.load %arg9[%c0_37, %c0_38] : memref<1x239xf32, #tpu.memory_space<vmem>>, vector<1x239xf32>
      tpu.vector_store %arg9[%c0_37, %c0_38], %65 {strides = array<i32>} : memref<1x239xf32, #tpu.memory_space<vmem>>, vector<1x239xf32>,
    } else {
    }
    %c0_2 = arith.constant 0 : index
    %c0_3 = arith.constant 0 : index
    %c0_4 = arith.constant 0 : index
    %5 = vector.load %arg4[%c0_2, %c0_3, %c0_4] : memref<2x1x256xf32, #tpu.memory_space<vmem>>, vector<2x1x256xf32>
    %6 = vector.extract_strided_slice %5 {offsets = [0, 0, 0], sizes = [2, 1, 240], strides = [1, 1, 1]} : vector<2x1x256xf32> to vector<2x1x240xf32>
    %7 = vector.extract_strided_slice %5 {offsets = [0, 0, 16], sizes = [2, 1, 240], strides = [1, 1, 1]} : vector<2x1x256xf32> to vector<2x1x240xf32>
    %8 = arith.maximumf %6, %7 : vector<2x1x240xf32>
    %9 = vector.extract_strided_slice %8 {offsets = [0, 0, 0], sizes = [2, 1, 239], strides = [1, 1, 1]} : vector<2x1x240xf32> to vector<2x1x239xf32>
    %10 = vector.extract_strided_slice %8 {offsets = [0, 0, 1], sizes = [2, 1, 239], strides = [1, 1, 1]} : vector<2x1x240xf32> to vector<2x1x239xf32>
    %11 = arith.maximumf %9, %10 : vector<2x1x239xf32>
    %12 = vector.broadcast %1 : vector<1x1x239xf32> to vector<2x1x239xf32>
    %13 = arith.mulf %11, %12 : vector<2x1x239xf32>
    %c0_5 = arith.constant 0 : index
    %c0_6 = arith.constant 0 : index
    %c0_7 = arith.constant 0 : index
    %14 = vector.load %arg2[%c0_5, %c0_6, %c0_7] : memref<2x4x256xf32, #tpu.memory_space<vmem>>, vector<2x4x256xf32>
    %15 = vector.extract_strided_slice %14 {offsets = [0, 0, 0], sizes = [2, 4, 240], strides = [1, 1, 1]} : vector<2x4x256xf32> to vector<2x4x240xf32>
    %16 = vector.extract_strided_slice %14 {offsets = [0, 0, 16], sizes = [2, 4, 240], strides = [1, 1, 1]} : vector<2x4x256xf32> to vector<2x4x240xf32>
    %17 = arith.maximumf %15, %16 : vector<2x4x240xf32>
    %18 = vector.extract_strided_slice %17 {offsets = [0, 0, 0], sizes = [2, 4, 239], strides = [1, 1, 1]} : vector<2x4x240xf32> to vector<2x4x239xf32>
    %19 = vector.extract_strided_slice %17 {offsets = [0, 0, 1], sizes = [2, 4, 239], strides = [1, 1, 1]} : vector<2x4x240xf32> to vector<2x4x239xf32>
    %20 = arith.maximumf %18, %19 : vector<2x4x239xf32>
    %c0_8 = arith.constant 0 : index
    %c0_9 = arith.constant 0 : index
    %c0_10 = arith.constant 0 : index
    %21 = vector.load %arg3[%c0_8, %c0_9, %c0_10] : memref<2x4x256xf32, #tpu.memory_space<vmem>>, vector<2x4x256xf32>
    %22 = vector.extract_strided_slice %21 {offsets = [0, 0, 0], sizes = [2, 4, 240], strides = [1, 1, 1]} : vector<2x4x256xf32> to vector<2x4x240xf32>
    %23 = vector.extract_strided_slice %21 {offsets = [0, 0, 16], sizes = [2, 4, 240], strides = [1, 1, 1]} : vector<2x4x256xf32> to vector<2x4x240xf32>
    %24 = arith.maximumf %22, %23 : vector<2x4x240xf32>
    %25 = vector.extract_strided_slice %24 {offsets = [0, 0, 0], sizes = [2, 4, 239], strides = [1, 1, 1]} : vector<2x4x240xf32> to vector<2x4x239xf32>
    %26 = vector.extract_strided_slice %24 {offsets = [0, 0, 1], sizes = [2, 4, 239], strides = [1, 1, 1]} : vector<2x4x240xf32> to vector<2x4x239xf32>
    %27 = arith.maximumf %25, %26 : vector<2x4x239xf32>
    %28 = vector.shape_cast %1 : vector<1x1x239xf32> to vector<1x1x239xf32>
    %29 = vector.broadcast %28 : vector<1x1x239xf32> to vector<2x4x239xf32>
    %30 = arith.addf %20, %27 : vector<2x4x239xf32>
    %31 = arith.mulf %30, %29 : vector<2x4x239xf32>
    %32 = arith.mulf %20, %20 : vector<2x4x239xf32>
    %33 = arith.mulf %27, %27 : vector<2x4x239xf32>
    %34 = arith.addf %32, %33 : vector<2x4x239xf32>
    %35 = arith.mulf %34, %29 : vector<2x4x239xf32>
    %36 = arith.subf %20, %27 : vector<2x4x239xf32>
    %37 = vector.broadcast %13 : vector<2x1x239xf32> to vector<2x4x239xf32>
    %38 = arith.mulf %36, %37 : vector<2x4x239xf32>
    %39 = math.absf %38 : vector<2x4x239xf32>
    %c0_11 = arith.constant 0 : index
    %c0_12 = arith.constant 0 : index
    %40 = vector.load %arg7[%c0_11, %c0_12] : memref<1x239xf32, #tpu.memory_space<vmem>>, vector<1x239xf32>
    %cst = arith.constant dense<0.000000e+00> : vector<4x239xf32>
    %41 = vector.multi_reduction <add>, %31, %cst [0] : vector<2x4x239xf32> to vector<4x239xf32>
    %cst_13 = arith.constant dense<0.000000e+00> : vector<239xf32>
    %42 = vector.multi_reduction <add>, %41, %cst_13 [0] : vector<4x239xf32> to vector<239xf32>
    %43 = vector.shape_cast %42 : vector<239xf32> to vector<1x239xf32>
    %44 = arith.addf %40, %43 : vector<1x239xf32>
    %c0_14 = arith.constant 0 : index
    %c0_15 = arith.constant 0 : index
    %45 = vector.load %arg7[%c0_14, %c0_15] : memref<1x239xf32, #tpu.memory_space<vmem>>, vector<1x239xf32>
    tpu.vector_store %arg7[%c0_14, %c0_15], %44 {strides = array<i32>} : memref<1x239xf32, #tpu.memory_space<vmem>>, vector<1x239xf32>,
    %c0_16 = arith.constant 0 : index
    %c0_17 = arith.constant 0 : index
    %46 = vector.load %arg8[%c0_16, %c0_17] : memref<1x239xf32, #tpu.memory_space<vmem>>, vector<1x239xf32>
    %cst_18 = arith.constant dense<0.000000e+00> : vector<4x239xf32>
    %47 = vector.multi_reduction <add>, %35, %cst_18 [0] : vector<2x4x239xf32> to vector<4x239xf32>
    %cst_19 = arith.constant dense<0.000000e+00> : vector<239xf32>
    %48 = vector.multi_reduction <add>, %47, %cst_19 [0] : vector<4x239xf32> to vector<239xf32>
    %49 = vector.shape_cast %48 : vector<239xf32> to vector<1x239xf32>
    %50 = arith.addf %46, %49 : vector<1x239xf32>
    %c0_20 = arith.constant 0 : index
    %c0_21 = arith.constant 0 : index
    %51 = vector.load %arg8[%c0_20, %c0_21] : memref<1x239xf32, #tpu.memory_space<vmem>>, vector<1x239xf32>
    tpu.vector_store %arg8[%c0_20, %c0_21], %50 {strides = array<i32>} : memref<1x239xf32, #tpu.memory_space<vmem>>, vector<1x239xf32>,
    %c0_22 = arith.constant 0 : index
    %c0_23 = arith.constant 0 : index
    %52 = vector.load %arg9[%c0_22, %c0_23] : memref<1x239xf32, #tpu.memory_space<vmem>>, vector<1x239xf32>
    %cst_24 = arith.constant dense<0.000000e+00> : vector<4x239xf32>
    %53 = vector.multi_reduction <add>, %39, %cst_24 [0] : vector<2x4x239xf32> to vector<4x239xf32>
    %cst_25 = arith.constant dense<0.000000e+00> : vector<239xf32>
    %54 = vector.multi_reduction <add>, %53, %cst_25 [0] : vector<4x239xf32> to vector<239xf32>
    %55 = vector.shape_cast %54 : vector<239xf32> to vector<1x239xf32>
    %56 = arith.addf %52, %55 : vector<1x239xf32>
    %c0_26 = arith.constant 0 : index
    %c0_27 = arith.constant 0 : index
    %57 = vector.load %arg9[%c0_26, %c0_27] : memref<1x239xf32, #tpu.memory_space<vmem>>, vector<1x239xf32>
    tpu.vector_store %arg9[%c0_26, %c0_27], %56 {strides = array<i32>} : memref<1x239xf32, #tpu.memory_space<vmem>>, vector<1x239xf32>,
    %c0_i32_28 = arith.constant 0 : i32
    %58 = arith.cmpi eq, %arg1, %c0_i32_28 : i32
    %59 = arith.extui %58 : i1 to i32
    %c0_i32_29 = arith.constant 0 : i32
    %60 = arith.cmpi ne, %59, %c0_i32_29 : i32
    scf.if %60 {
      %c0_30 = arith.constant 0 : index
      %c0_31 = arith.constant 0 : index
      %61 = vector.load %arg7[%c0_30, %c0_31] : memref<1x239xf32, #tpu.memory_space<vmem>>, vector<1x239xf32>
      %62 = vector.shape_cast %61 : vector<1x239xf32> to vector<1x1x239xf32>
      %cst_32 = arith.constant dense<0.000000e+00> : vector<1xf32>
      %63 = vector.multi_reduction <add>, %62, %cst_32 [1, 2] : vector<1x1x239xf32> to vector<1xf32>
      %64 = vector.shape_cast %63 : vector<1xf32> to vector<1x1x1xf32>
      %65 = vector.extract %64[0, 0, 0] : f32 from vector<1x1x1xf32>
      %c0_33 = arith.constant 0 : index
      %c0_34 = arith.constant 0 : index
      %66 = vector.load %arg8[%c0_33, %c0_34] : memref<1x239xf32, #tpu.memory_space<vmem>>, vector<1x239xf32>
      %67 = vector.shape_cast %66 : vector<1x239xf32> to vector<1x1x239xf32>
      %cst_35 = arith.constant dense<0.000000e+00> : vector<1xf32>
      %68 = vector.multi_reduction <add>, %67, %cst_35 [1, 2] : vector<1x1x239xf32> to vector<1xf32>
      %69 = vector.shape_cast %68 : vector<1xf32> to vector<1x1x1xf32>
      %70 = vector.extract %69[0, 0, 0] : f32 from vector<1x1x1xf32>
      %c0_36 = arith.constant 0 : index
      %c0_37 = arith.constant 0 : index
      %71 = vector.load %arg9[%c0_36, %c0_37] : memref<1x239xf32, #tpu.memory_space<vmem>>, vector<1x239xf32>
      %72 = vector.shape_cast %71 : vector<1x239xf32> to vector<1x1x239xf32>
      %cst_38 = arith.constant dense<0.000000e+00> : vector<1xf32>
      %73 = vector.multi_reduction <add>, %72, %cst_38 [1, 2] : vector<1x1x239xf32> to vector<1xf32>
      %74 = vector.shape_cast %73 : vector<1xf32> to vector<1x1x1xf32>
      %75 = vector.extract %74[0, 0, 0] : f32 from vector<1x1x1xf32>
      %76 = tpu.iota {dimensions = array<i32: 2>} : vector<1x1x128xi32>
      %c0_i32_39 = arith.constant 0 : i32
      %77 = vector.broadcast %c0_i32_39 : i32 to vector<1x1x128xi32>
      %78 = arith.cmpi eq, %76, %77 : vector<1x1x128xi32>
      %cst_40 = arith.constant 0.000000e+00 : f32
      %79 = vector.broadcast %65 : f32 to vector<1x1x128xf32>
      %80 = vector.broadcast %cst_40 : f32 to vector<1x1x128xf32>
      %81 = arith.select %78, %79, %80 : vector<1x1x128xi1>, vector<1x1x128xf32>
      %c1_i32 = arith.constant 1 : i32
      %82 = vector.broadcast %c1_i32 : i32 to vector<1x1x128xi32>
      %83 = arith.cmpi eq, %76, %82 : vector<1x1x128xi32>
      %cst_41 = arith.constant 0.000000e+00 : f32
      %84 = vector.broadcast %70 : f32 to vector<1x1x128xf32>
      %85 = vector.broadcast %cst_41 : f32 to vector<1x1x128xf32>
      %86 = arith.select %83, %84, %85 : vector<1x1x128xi1>, vector<1x1x128xf32>
      %87 = arith.addf %81, %86 : vector<1x1x128xf32>
      %c2_i32 = arith.constant 2 : i32
      %88 = vector.broadcast %c2_i32 : i32 to vector<1x1x128xi32>
      %89 = arith.cmpi eq, %76, %88 : vector<1x1x128xi32>
      %cst_42 = arith.constant 0.000000e+00 : f32
      %90 = vector.broadcast %75 : f32 to vector<1x1x128xf32>
      %91 = vector.broadcast %cst_42 : f32 to vector<1x1x128xf32>
      %92 = arith.select %89, %90, %91 : vector<1x1x128xi1>, vector<1x1x128xf32>
      %93 = arith.addf %87, %92 : vector<1x1x128xf32>
      %c0_43 = arith.constant 0 : index
      %c0_44 = arith.constant 0 : index
      %c0_45 = arith.constant 0 : index
      %94 = vector.load %arg6[%c0_43, %c0_44, %c0_45] : memref<1x1x128xf32, #tpu.memory_space<vmem>>, vector<1x1x128xf32>
      tpu.vector_store %arg6[%c0_43, %c0_44, %c0_45], %93 {strides = array<i32>} : memref<1x1x128xf32, #tpu.memory_space<vmem>>, vector<1x1x128xf32>,
    } else {
    }
    return
  }
  func.func @transform_0(%arg0: i32, %arg1: i32) -> (i32, i32, i32) {
    %c0_i32 = arith.constant 0 : i32
    %c0_i32_0 = arith.constant 0 : i32
    return %arg0, %arg1, %c0_i32 : i32, i32, i32
  }
  func.func @transform_1(%arg0: i32, %arg1: i32) -> (i32, i32, i32) {
    %c0_i32 = arith.constant 0 : i32
    %c0_i32_0 = arith.constant 0 : i32
    return %arg0, %arg1, %c0_i32 : i32, i32, i32
  }
  func.func @transform_2(%arg0: i32, %arg1: i32) -> (i32, i32, i32) {
    %c0_i32 = arith.constant 0 : i32
    %c0_i32_0 = arith.constant 0 : i32
    %c0_i32_1 = arith.constant 0 : i32
    return %arg0, %c0_i32, %c0_i32_0 : i32, i32, i32
  }
  func.func @transform_3(%arg0: i32, %arg1: i32) -> (i32, i32) {
    %c0_i32 = arith.constant 0 : i32
    %c0_i32_0 = arith.constant 0 : i32
    %c0_i32_1 = arith.constant 0 : i32
    return %c0_i32, %c0_i32_0 : i32, i32
  }
  func.func @transform_4(%arg0: i32, %arg1: i32) -> (i32, i32, i32) {
    %c0_i32 = arith.constant 0 : i32
    %c0_i32_0 = arith.constant 0 : i32
    %c0_i32_1 = arith.constant 0 : i32
    return %arg0, %c0_i32, %c0_i32_0 : i32, i32, i32
  }
}

</mosaic_0001>

<bundles_post_ra>
// kernel: tpu_custom_call.1
= control target key start
LH: loop header
LB: loop body
LE: loop exit
PB: predicated region body
PF: predicated region fallthrough
CT: control target
= control target key end

     0   :  { %9 = vsyncpa [#allocation6], 0  ;;  %s699_s0 = inlined_call_operand.hbm [shape: f32[2,4,256], index: 0, kind: input, shape index: {}]   ;;  %s700_s1 = inlined_call_operand.hbm [shape: f32[2,4,256], index: 1, kind: input, shape index: {}]   ;;  %s701_s2 = inlined_call_operand.vmem [shape: f32[2,1,256], index: 2, kind: input, shape index: {}]   ;;  %s702_s3 = inlined_call_operand.vmem [shape: f32[1,239], index: 3, kind: input, shape index: {}]   ;;  %s703_s4 = inlined_call_operand.hbm [shape: f32[1,1,128], index: 4, kind: output, shape index: {}]  }
   0x1   :  { %10 = vsyncpa [#allocation9], 0 }
   0x2   :  { %11 = vsyncpa [#allocation7], 0  ;;  %s544_s15 = smov [#allocation5]   ;;  %s472_s19 = scalar_lea.hbm %s699_s0, 256 }
   0x3   :  { %s17_s16 = sshll.u32 %s544_s15, 4  ;;  %p473_p0 = scmp.ne.s32.totalorder %s699_s0, %s472_s19  ;;  %s18_s16 = int_to_ptr.vmem [resolvable:$true] %s17_s16 }
   0x4   :  { %p476_p1 = scmp.lt.u32.totalorder %s472_s19, %s699_s0 }
   0x6   :  { %p478_p2 = pnand %p476_p1, %p473_p0 }
   0x8   :  { %481 = shalt.err (!%p478_p2)
}
   0x9   :  { %s482_s24 = scalar_lea.vmem %s18_s16, 256  ;;  %p487_p4 = scmp.lt.s32.totalorder %s18_s16, %s18_s16 }
   0xa   :  { %p483_p3 = scmp.ne.s32.totalorder %s18_s16, %s482_s24  ;;  %p488_p5 = scmp.lt.s32.totalorder %s482_s24, %s482_s24 }
   0xc   :  { %p489_p6 = por %p488_p5, %p487_p4 }
   0xe   :  { %p490_p7 = pnand %p489_p6, %p483_p3 }
  0x10   :  { %493 = shalt.err (!%p490_p7)
}
  0x11   :  { %s545_s25 = smov 128   ;;  %s546_s26 = smov 8  }
  0x12   :  { %23 = dma.hbm_to_vmem [thread:$0]  %s699_s0, 256, %s18_s16, [#allocation6], %s545_s25, %s545_s25, %s546_s26  }
  0x13   :  { %s547_s29 = smov [#allocation8]   ;;  %s494_s7 = scalar_lea.hbm %s700_s1, 256 }
  0x14   :  { %s29_s30 = sshll.u32 %s547_s29, 4  ;;  %p495_p8 = scmp.ne.s32.totalorder %s700_s1, %s494_s7  ;;  %s30_s30 = int_to_ptr.vmem [resolvable:$true] %s29_s30 }
  0x15   :  { %p498_p9 = scmp.lt.u32.totalorder %s494_s7, %s700_s1 }
  0x17   :  { %p500_p10 = pnand %p498_p9, %p495_p8 }
  0x19   :  { %503 = shalt.err (!%p500_p10)
}
  0x1a   :  { %s504_s12 = scalar_lea.vmem %s30_s30, 256  ;;  %p509_p12 = scmp.lt.s32.totalorder %s30_s30, %s30_s30 }
  0x1b   :  { %p505_p11 = scmp.ne.s32.totalorder %s30_s30, %s504_s12  ;;  %p510_p13 = scmp.lt.s32.totalorder %s504_s12, %s504_s12 }
  0x1d   :  { %p511_p0 = por %p510_p13, %p509_p12 }
  0x1f   :  { %p512_p1 = pnand %p511_p0, %p505_p11 }
  0x21   :  { %515 = shalt.err (!%p512_p1)
}
  0x22   :  { %35 = dma.hbm_to_vmem [thread:$0]  %s700_s1, 256, %s30_s30, [#allocation9], %s545_s25, %s545_s25, %s546_s26  }
  0x23   :  { %538 = dma.done.wait [#allocation6], 256  }
  0x24   :  { %539 = vsyncadd [#allocation6], 4294967040 }
  0x25   :  { %540 = dma.done.wait [#allocation9], 256  }
  0x26   :  { %541 = vsyncadd [#allocation9], 4294967040  ;;  %v58_v0 = vld [vmem:[%s701_s2] sm:$0x3]  ;;  %v92_v1 = vld [vmem:[#allocation5] sm:$0xff]  ;;  %s548_s16 = smov 112   ;;  %v51_v26 = vlaneseq }
  0x27   :  { %62 = vrot.lane.b32.xlu0 %v58_v0, %s548_s16  ;;  %96 = vrot.lane.b32.xlu1 %v92_v1, %s548_s16  ;;  %v59_v2 = vld [vmem:[%s701_s2 + $0x2] sm:$0x3]  ;;  %v93_v3 = vld [vmem:[#allocation5 + $0x8] sm:$0xff]  ;;  %v122_v4 = vld [vmem:[#allocation8] sm:$0xff]  ;;  %vm68_vm0 = vcmask 916480   ;;  %s549_s1 = smov 127  }
  0x28   :  { %v123_v5 = vld [vmem:[#allocation8 + $0x8] sm:$0xff]  ;;  %vm615_vm1 = vcmp.lt.s32.totalorder %v51_v26, 239  ;;  %v550_v32 = vmov 0.0   ;;  %vm83_vm2 = vcmask 1039360   ;;  %v626_v35 = vshrl.u32 %v51_v26, 7  ;;  %s552_s22 = smov [#allocation10]  }
  0x29   :  { %55 = vst.msk [vmem:[#allocation2] sm:$0x3] %vm615_vm1, %v550_v32  ;;  %56 = vst.msk [vmem:[#allocation3] sm:$0x3] %vm615_vm1, %v550_v32  ;;  %v46_v37 = vld [vmem:[%s702_s3] sm:$0x3] }
  0x2a   :  { %57 = vst.msk [vmem:[#allocation4] sm:$0x3] %vm615_vm1, %v550_v32  ;;  %v633_v43 = vsub.s32 0, %v626_v35  ;;  %v636_v44 = vsub.s32 1, %v626_v35  ;;  %vm210_vm3 = vcmask 1043456   ;;  %vm214_vm4 = vcmask 904192  }
  0x2b   :  { %64 = vrot.lane.b32.xlu0 %v59_v2, %s548_s16  ;;  %98 = vrot.lane.b32.xlu1 %v93_v3, %s548_s16  ;;  %vm365_vm5 = vcmask 1040384   ;;  %vm367_vm6 = vcmask 901120   ;;  %s447_s23 = sshll.u32 %s552_s22, 4  ;;  %s448_s23 = int_to_ptr.vmem [resolvable:$true] %s447_s23 }
  0x2c   :  { %v156_v48 = vrot.slane %v46_v37, %v633_v43  ;;  %v160_v49 = vrot.slane %v46_v37, %v636_v44  ;;  %s516_s24 = scalar_lea.vmem %s448_s23, 16  ;;  %s520_s25 = scalar_lea.vmem %s448_s23, 32 }
  0x2d   :  { %p517_p2 = scmp.ne.s32.totalorder %s448_s23, %s516_s24  ;;  %p521_p3 = scmp.lt.s32.totalorder %s448_s23, %s448_s23 }
  0x2e   :  { %v163_v60 = vcombine.low %v156_v48, %v160_v49  ;;  %p522_p4 = scmp.lt.s32.totalorder %s520_s25, %s516_s24 }
  0x2f   :  { %126 = vrot.lane.b32.xlu0 %v122_v4, %s548_s16  ;;  %128 = vrot.lane.b32.xlu1 %v123_v5, %s548_s16 }
  0x30   :  { %p523_p5 = por %p522_p4, %p521_p3 }
  0x32   :  { %p524_p6 = pnand %p523_p5, %p517_p2 }
  0x99   :  { %v63_v6 = vpop.permute.xlu0 %62  ;;  %v97_v7 = vpop.permute.xlu1 %96 }
  0x9a   :  { %v66_v8 = vrot.slane %v63_v6, 1  ;;  %v100_v9 = vrot.slane %v97_v7, 4 }
  0x9c   :  { %v69_v10 = vsel %vm68_vm0, %v63_v6, %v66_v8  ;;  %v102_v14 = vsel %vm68_vm0, %v97_v7, %v100_v9 }
  0x9d   :  { %v73_v11 = vmax.f32 %v58_v0, %v69_v10  ;;  %v65_v12 = vpop.permute.xlu0 %64  ;;  %v99_v13 = vpop.permute.xlu1 %98  ;;  %v106_v18 = vmax.f32 %v92_v1, %v102_v14 }
  0x9e   :  { %v67_v15 = vrot.slane %v65_v12, 1  ;;  %v101_v16 = vrot.slane %v99_v13, 4 }
  0x9f   :  { %77 = vrot.lane.b32.xlu0 %v73_v11, %s549_s1 }
  0xa0   :  { %v70_v17 = vsel %vm68_vm0, %v65_v12, %v67_v15  ;;  %v103_v22 = vsel %vm68_vm0, %v99_v13, %v101_v16 }
  0xa1   :  { %v74_v19 = vmax.f32 %v59_v2, %v70_v17  ;;  %v127_v20 = vpop.permute.xlu0 %126  ;;  %v129_v21 = vpop.permute.xlu1 %128  ;;  %v107_v27 = vmax.f32 %v93_v3, %v103_v22 }
  0xa2   :  { %v130_v23 = vrot.slane %v127_v20, 4  ;;  %v131_v24 = vrot.slane %v129_v21, 4 }
  0xa3   :  { %110 = vrot.lane.b32.xlu0 %v106_v18, %s549_s1  ;;  %79 = vrot.lane.b32.xlu1 %v74_v19, %s549_s1 }
  0xa4   :  { %v132_v25 = vsel %vm68_vm0, %v127_v20, %v130_v23  ;;  %v133_v29 = vsel %vm68_vm0, %v129_v21, %v131_v24  ;;  %v551_v23 = vmov 1966171168  }
  0xa5   :  { %v136_v28 = vmax.f32 %v122_v4, %v132_v25  ;;  %v137_v31 = vmax.f32 %v123_v5, %v133_v29  ;;  %v236_v24 = vunpack.c.l.s4 %v551_v23 }
  0xa7   :  { %112 = vrot.lane.b32.xlu1 %v107_v27, %s549_s1  ;;  %140 = vrot.lane.b32.xlu0 %v136_v28, %s549_s1 }
  0xab   :  { %142 = vrot.lane.b32.xlu1 %v137_v31, %s549_s1 }
 0x111   :  { %v78_v33 = vpop.permute.xlu0 %77 }
 0x112   :  { %v81_v34 = vrot.slane %v78_v33, 1 }
 0x114   :  { %v84_v36 = vsel %vm83_vm2, %v78_v33, %v81_v34 }
 0x115   :  { %v88_v38 = vmax.f32 %v73_v11, %v84_v36  ;;  %v80_v39 = vpop.permute.xlu1 %79  ;;  %v111_v40 = vpop.permute.xlu0 %110 }
 0x116   :  { %v82_v41 = vrot.slane %v80_v39, 1  ;;  %v114_v42 = vrot.slane %v111_v40, 4 }
 0x117   :  { %v90_v45 = vmul.f32 %v88_v38, %v46_v37 }
 0x118   :  { %v85_v46 = vsel %vm83_vm2, %v80_v39, %v82_v41  ;;  %v116_v47 = vsel %vm83_vm2, %v111_v40, %v114_v42 }
 0x119   :  { %v89_v50 = vmax.f32 %v74_v19, %v85_v46  ;;  %v113_v51 = vpop.permute.xlu1 %112  ;;  %v141_v52 = vpop.permute.xlu0 %140  ;;  %v120_v53 = vmax.f32 %v106_v18, %v116_v47  ;;  %v182_v57 = vrot.slane %v90_v45, %v633_v43  ;;  %v186_v58 = vrot.slane %v90_v45, %v636_v44 }
 0x11a   :  { %v115_v54 = vrot.slane %v113_v51, 4  ;;  %v144_v55 = vrot.slane %v141_v52, 4 }
 0x11b   :  { %v91_v56 = vmul.f32 %v89_v50, %v46_v37  ;;  %v167_v0 = vmul.f32 %v120_v53, %v120_v53  ;;  %v195_v6 = vcombine.low %v182_v57, %v186_v58 }
 0x11c   :  { %v146_v59 = vsel %vm83_vm2, %v141_v52, %v144_v55  ;;  %v117_v61 = vsel %vm83_vm2, %v113_v51, %v115_v54 }
 0x11d   :  { %v150_v62 = vmax.f32 %v136_v28, %v146_v59  ;;  %v143_v63 = vpop.permute.xlu1 %142  ;;  %v190_v2 = vrot.slane %v91_v56, %v633_v43  ;;  %v194_v3 = vrot.slane %v91_v56, %v636_v44  ;;  %v121_v7 = vmax.f32 %v107_v27, %v117_v61 }
 0x11e   :  { %v145_v1 = vrot.slane %v143_v63, 4 }
 0x11f   :  { %v161_v4 = vadd.f32 %v150_v62, %v120_v53  ;;  %v169_v5 = vmul.f32 %v150_v62, %v150_v62  ;;  %v175_v8 = vsub.f32 %v120_v53, %v150_v62  ;;  %v196_v14 = vcombine.low %v190_v2, %v194_v3 }
 0x120   :  { %v147_v9 = vsel %vm83_vm2, %v143_v63, %v145_v1  ;;  %v168_v17 = vmul.f32 %v121_v7, %v121_v7 }
 0x121   :  { %v165_v10 = vmul.f32 %v163_v60, %v161_v4  ;;  %v171_v11 = vadd.f32 %v169_v5, %v167_v0  ;;  %v151_v12 = vmax.f32 %v137_v31, %v147_v9  ;;  %v199_v13 = vmul.f32 %v195_v6, %v175_v8 }
 0x123   :  { %v206_v15 = vcombine.high %v165_v10, %v165_v10  ;;  %v162_v16 = vadd.f32 %v151_v12, %v121_v7  ;;  %v173_v18 = vmul.f32 %v171_v11, %v163_v60  ;;  %v170_v19 = vmul.f32 %v151_v12, %v151_v12 }
 0x124   :  { %v176_v20 = vsub.f32 %v121_v7, %v151_v12  ;;  %v201_v21 = vand.u32 2147483647, %v199_v13  ;;  %v211_v28 = vsel %vm210_vm3, %v165_v10, 0.0 }
 0x125   :  { %v166_v22 = vmul.f32 %v163_v60, %v162_v16  ;;  %v172_v25 = vadd.f32 %v170_v19, %v168_v17  ;;  %v215_v29 = vsel %vm214_vm4, %v206_v15, 0.0  ;;  %v259_v33 = vcombine.high %v173_v18, %v173_v18 }
 0x126   :  { %v200_v27 = vmul.f32 %v196_v14, %v176_v20  ;;  %v263_v38 = vsel %vm210_vm3, %v173_v18, 0.0  ;;  %v306_v39 = vcombine.high %v201_v21, %v201_v21  ;;  %v310_v40 = vsel %vm210_vm3, %v201_v21, 0.0 }
 0x127   :  { %v207_v31 = vcombine.high %v166_v22, %v166_v22  ;;  %v212_v32 = vsel %vm210_vm3, %v166_v22, 0.0  ;;  %v174_v34 = vmul.f32 %v172_v25, %v163_v60  ;;  %v266_v52 = vsel %vm214_vm4, %v259_v33, 0.0 }
 0x128   :  { %v202_v36 = vand.u32 2147483647, %v200_v27  ;;  %v213_v37 = vadd.f32 %v212_v32, %v211_v28  ;;  %v313_v60 = vsel %vm214_vm4, %v306_v39, 0.0  ;;  %v237_v14 = vunpack.c.0.s8 %v236_v24 }
 0x129   :  { %v216_v41 = vsel %vm214_vm4, %v207_v31, 0.0  ;;  %v260_v46 = vcombine.high %v174_v34, %v174_v34  ;;  %v264_v47 = vsel %vm210_vm3, %v174_v34, 0.0 }
 0x12a   :  { %v217_v42 = vadd.f32 %v216_v41, %v215_v29  ;;  %v218_v45 = vsel %vm210_vm3, %v213_v37, 0.0  ;;  %v265_v49 = vadd.f32 %v264_v47, %v263_v38  ;;  %v307_v50 = vcombine.high %v202_v36, %v202_v36 }
 0x12b   :  { %v219_v48 = vrot.slane %v218_v45, 4  ;;  %v311_v51 = vsel %vm210_vm3, %v202_v36, 0.0  ;;  %v267_v54 = vsel %vm214_vm4, %v260_v46, 0.0  ;;  %v240_v28 = vsub.s32 %v237_v14, %v626_v35 }
 0x12c   :  { %v225_v53 = vsel %vm214_vm4, %v217_v42, 0.0  ;;  %v312_v55 = vadd.f32 %v311_v51, %v310_v40  ;;  %v268_v58 = vadd.f32 %v267_v54, %v266_v52  ;;  %v269_v59 = vsel %vm210_vm3, %v265_v49, 0.0  ;;  %v203_v40 = vld [vmem:[#allocation2] sm:$0x3]  ;;  %v303_v52 = vld [vmem:[#allocation4] sm:$0x3] }
 0x12d   :  { %v220_v56 = vadd.f32 %v219_v48, %v218_v45  ;;  %v226_v57 = vrot.slane %v225_v53, 4  ;;  %v270_v61 = vrot.slane %v269_v59, 4  ;;  %v314_v62 = vsel %vm214_vm4, %v307_v50, 0.0  ;;  %v256_v50 = vld [vmem:[#allocation3] sm:$0x3] }
 0x12e   :  { %v316_v63 = vsel %vm210_vm3, %v312_v55, 0.0  ;;  %v276_v2 = vsel %vm214_vm4, %v268_v58, 0.0  ;;  %v315_v3 = vadd.f32 %v314_v62, %v313_v60 }
 0x12f   :  { %v221_v0 = vrot.slane %v220_v56, 2  ;;  %v227_v1 = vadd.f32 %v226_v57, %v225_v53  ;;  %v271_v4 = vadd.f32 %v270_v61, %v269_v59  ;;  %v277_v5 = vrot.slane %v276_v2, 4 }
 0x130   :  { %v317_v6 = vrot.slane %v316_v63, 4  ;;  %v323_v9 = vsel %vm214_vm4, %v315_v3, 0.0 }
 0x131   :  { %v222_v7 = vadd.f32 %v221_v0, %v220_v56  ;;  %v228_v8 = vrot.slane %v227_v1, 2  ;;  %v272_v10 = vrot.slane %v271_v4, 2  ;;  %v278_v11 = vadd.f32 %v277_v5, %v276_v2 }
 0x132   :  { %v318_v12 = vadd.f32 %v317_v6, %v316_v63  ;;  %v324_v13 = vrot.slane %v323_v9, 4 }
 0x133   :  { %v223_v15 = vrot.slane %v222_v7, 1  ;;  %v229_v16 = vadd.f32 %v228_v8, %v227_v1  ;;  %v273_v17 = vadd.f32 %v272_v10, %v271_v4  ;;  %v279_v18 = vrot.slane %v278_v11, 2 }
 0x134   :  { %v319_v19 = vrot.slane %v318_v12, 2  ;;  %v325_v20 = vadd.f32 %v324_v13, %v323_v9 }
 0x135   :  { %v230_v21 = vrot.slane %v229_v16, 1  ;;  %v274_v22 = vrot.slane %v273_v17, 1  ;;  %v280_v23 = vadd.f32 %v279_v18, %v278_v11  ;;  %v224_v29 = vadd.f32 %v223_v15, %v222_v7 }
 0x136   :  { %v320_v25 = vadd.f32 %v319_v19, %v318_v12  ;;  %v326_v27 = vrot.slane %v325_v20, 2 }
 0x137   :  { %v231_v31 = vadd.f32 %v230_v21, %v229_v16  ;;  %v281_v32 = vrot.slane %v280_v23, 1  ;;  %v275_v24 = vadd.f32 %v274_v22, %v273_v17 }
 0x138   :  { %v321_v33 = vrot.slane %v320_v25, 1  ;;  %v327_v34 = vadd.f32 %v326_v27, %v325_v20 }
 0x139   :  { %v234_v36 = vcombine.low %v224_v29, %v231_v31  ;;  %v282_v37 = vadd.f32 %v281_v32, %v280_v23  ;;  %v428_v31 = vand.u32 127, %v51_v26 }
 0x13a   :  { %v328_v38 = vrot.slane %v327_v34, 1  ;;  %v322_v42 = vadd.f32 %v321_v33, %v320_v25 }
 0x13b   :  { %v241_v39 = vrot.slane %v234_v36, %v240_v28  ;;  %v285_v41 = vcombine.low %v275_v24, %v282_v37  ;;  %vm429_vm7 = vcmp.eq.s32.totalorder %v428_v31, 0  ;;  %vm432_vm8 = vcmp.eq.s32.totalorder %v428_v31, 1 }
 0x13c   :  { %v329_v45 = vadd.f32 %v328_v38, %v327_v34  ;;  %vm436_vm9 = vcmp.eq.s32.totalorder %v428_v31, 2 }
 0x13d   :  { %v248_v46 = vrot.slane %v241_v39, %v240_v28  ;;  %v292_v47 = vrot.slane %v285_v41, %v240_v28 }
 0x13e   :  { %v332_v48 = vcombine.low %v322_v42, %v329_v45 }
 0x13f   :  { %v250_v49 = vadd.f32 %v248_v46, %v203_v40  ;;  %v299_v35 = vrot.slane %v292_v47, %v240_v28 }
 0x140   :  { %v339_v51 = vrot.slane %v332_v48, %v240_v28 }
 0x141   :  { %255 = vst.msk [vmem:[#allocation2] sm:$0x3] %vm615_vm1, %v250_v49  ;;  %v301_v53 = vadd.f32 %v299_v35, %v256_v50 }
 0x142   :  { %v346_v54 = vrot.slane %v339_v51, %v240_v28 }
 0x143   :  { %302 = vst.msk [vmem:[#allocation3] sm:$0x3] %vm615_vm1, %v301_v53 }
 0x144   :  { %v348_v55 = vadd.f32 %v346_v54, %v303_v52 }
 0x146   :  { %349 = vst.msk [vmem:[#allocation4] sm:$0x3] %vm615_vm1, %v348_v55 }
 0x148   :  { %v353_v56 = vld [vmem:[#allocation2] sm:$0x3] }
 0x149   :  { %v358_v57 = vrot.slane %v353_v56, %v633_v43  ;;  %v362_v58 = vrot.slane %v353_v56, %v636_v44 }
 0x14a   :  { %v379_v61 = vld [vmem:[#allocation3] sm:$0x3] }
 0x14b   :  { %v366_v59 = vsel %vm365_vm5, %v358_v57, 0.0  ;;  %v368_v60 = vsel %vm367_vm6, %v362_v58, 0.0  ;;  %v384_v63 = vrot.slane %v379_v61, %v633_v43  ;;  %v388_v0 = vrot.slane %v379_v61, %v636_v44 }
 0x14c   :  { %v369_v62 = vadd.f32 %v368_v60, %v366_v59 }
 0x14d   :  { %v403_v1 = vld [vmem:[#allocation4] sm:$0x3]  ;;  %v391_v30 = vsel %vm365_vm5, %v384_v63, 0.0  ;;  %v392_v2 = vsel %vm367_vm6, %v388_v0, 0.0 }
 0x14e   :  { %370 = vadd.xlane.f32.xlu0 %v369_v62  ;;  %v408_v3 = vrot.slane %v403_v1, %v633_v43  ;;  %v412_v4 = vrot.slane %v403_v1, %v636_v44  ;;  %v393_v5 = vadd.f32 %v392_v2, %v391_v30 }
 0x150   :  { %v415_v6 = vsel %vm365_vm5, %v408_v3, 0.0  ;;  %v416_v7 = vsel %vm367_vm6, %v412_v4, 0.0  ;;  %394 = vadd.xlane.f32.xlu1 %v393_v5 }
 0x151   :  { %v417_v8 = vadd.f32 %v416_v7, %v415_v6 }
 0x153   :  { %418 = vadd.xlane.f32.xlu0 %v417_v8 }
 0x1db   :  { %v371_v9 = vpop.xlane.xlu0 %370 }
 0x1dc   :  { %v372_v10 = vrot.slane %v371_v9, 4 }
 0x1dd   :  { %v395_v12 = vpop.xlane.xlu1 %394 }
 0x1de   :  { %v373_v11 = vadd.f32 %v372_v10, %v371_v9  ;;  %v396_v13 = vrot.slane %v395_v12, 4 }
 0x1e0   :  { %v374_v14 = vrot.slane %v373_v11, 2  ;;  %v419_v15 = vpop.xlane.xlu0 %418  ;;  %v397_v16 = vadd.f32 %v396_v13, %v395_v12 }
 0x1e1   :  { %v420_v17 = vrot.slane %v419_v15, 4 }
 0x1e2   :  { %v375_v43 = vadd.f32 %v374_v14, %v373_v11  ;;  %v398_v18 = vrot.slane %v397_v16, 2 }
 0x1e3   :  { %v421_v44 = vadd.f32 %v420_v17, %v419_v15 }
 0x1e4   :  { %v376_v19 = vrot.slane %v375_v43, 1  ;;  %v399_v20 = vadd.f32 %v398_v18, %v397_v16 }
 0x1e5   :  { %v422_v21 = vrot.slane %v421_v44, 2 }
 0x1e6   :  { %v377_v22 = vadd.f32 %v376_v19, %v375_v43  ;;  %v400_v25 = vrot.slane %v399_v20, 1 }
 0x1e7   :  { %v423_v23 = vadd.f32 %v422_v21, %v421_v44 }
 0x1e8   :  { %457 = vpush %v377_v22  ;;  %v401_v27 = vadd.f32 %v400_v25, %v399_v20 }
 0x1e9   :  { %v424_v28 = vrot.slane %v423_v23, 1 }
 0x1ea   :  { %459 = vpush %v401_v27 }
 0x1eb   :  { %v425_v29 = vadd.f32 %v424_v28, %v423_v23 }
 0x1ed   :  { %461 = vpush %v425_v29 }
 0x219   :  { %s458_s3 = spop %457 }
 0x21a   :  { %v430_v32 = vstv %s458_s3 }
 0x21b   :  { %s460_s20 = spop %459  ;;  %v431_v34 = vsel %vm429_vm7, %v430_v32, 0.0 }
 0x21c   :  { %v433_v33 = vstv %s460_s20 }
 0x21d   :  { %v434_v36 = vsel %vm432_vm8, %v433_v33, 0.0 }
 0x21e   :  { %s462_s21 = spop %461  ;;  %v435_v24 = vadd.f32 %v434_v36, %v431_v34 }
 0x21f   :  { %v437_v37 = vstv %s462_s21 }
 0x220   :  { %v438_v38 = vsel %vm436_vm9, %v437_v37, 0.0 }
 0x221   :  { %v439_v39 = vadd.f32 %v438_v38, %v435_v24 }
 0x223   :  { %440 = vst [vmem:[#allocation10] sm:$0x1] %v439_v39 }
 0x224   :  { %527 = shalt.err (!%p524_p6)
}
 0x225   :  { %s528_s28 = scalar_lea.hbm %s703_s4, 16 }
 0x226   :  { %p529_p7 = scmp.ne.s32.totalorder %s703_s4, %s528_s28  ;;  %p532_p8 = scmp.lt.u32.totalorder %s528_s28, %s703_s4 }
 0x228   :  { %p534_p9 = pnand %p532_p8, %p529_p7 }
 0x22a   :  { %537 = shalt.err (!%p534_p9)
}
 0x22b   :  { %450 = dma.vmem_to_hbm [thread:$0]  %s448_s23, 16, %s703_s4, [#allocation7]  }
 0x22c   :  { %542 = dma.done.wait [#allocation7], 16  }
 0x22d   :  { %543 = vsyncadd [#allocation7], 4294967280 }
 0x22e   :  { %454 = vsyncpa [#allocation6], 1 }
 0x22f   :  { %455 = vsyncpa [#allocation9], 1 }
 0x230   :  { %456 = vsyncpa [#allocation7], 1 }

</bundles_post_ra>
